<compile_context>
chip_gen: v7x
topology: tpu7x:2x2x1
jax: 0.10.0
libtpu: 0.0.40
codegen_flags: <defaults>
</compile_context>

<pallas_src>
import numpy as np
import jax
import jax.numpy as jnp
from jax import lax
from jax.experimental import pallas as pl
from jax.experimental.pallas import tpu as pltpu

# --- model hyperparameters (small, consistent with the module) ---
D_MODEL = 32
NUM_HEADS = 4
DEPTH = D_MODEL // NUM_HEADS
BATCH = 2
SEQ = 8


def multi_head_attention(query, key, value, params):
    """Pallas forward for MultiHeadAttention (mask=None path)."""
    wq, wk, wv, wo, bo = params
    B, S, D = query.shape
    H = NUM_HEADS
    E = D // H
    scale = 1.0 / float(np.sqrt(E))

    # ---- wrapper-side packing: weight-only + one tiny activation stack -----
    x3 = jnp.stack([query, key, value]).reshape(3, B * S, D)       # (3, B*S, D)
    w3 = jnp.stack([wq * scale, wk, wv])                           # (3, D, D)
    bo2 = bo.reshape(1, D)                                         # (1, D)

    def kernel(x3_ref, w3_ref, wo_ref, bo_ref, o_ref):
        # Fused Q/K/V projection: one batched lane-wide matmul (3 MXU pushes).
        qkv = lax.dot_general(
            x3_ref[...], w3_ref[...],
            dimension_numbers=(((2,), (1,)), ((0,), (0,))),
            preferred_element_type=jnp.float32)                    # (3, B*S, D)
        q3 = qkv[0].reshape(B, S, D)     # leading-dim index + natural reshape
        k3 = qkv[1].reshape(B, S, D)
        v3 = qkv[2].reshape(B, S, D)

        # TODO(synk): additive attention-mask path (mask * -1e9) not wired in;
        #             only the mask=None path is implemented.

        # Per-head attention.  H is tiny and static, so a trace-time Python
        # loop with aligned lane slices is used instead of a
        # (B,S,H,E)->(B,H,S,E) transpose (major<->tiled dim swaps are the one
        # relayout Mosaic may refuse to lower; static lane slices are safe).
        out_acc = None
        for h in range(H):
            sl = slice(h * E, (h + 1) * E)
            qh = q3[:, :, sl]                                       # (B, S, E)
            kh = k3[:, :, sl]
            vh = v3[:, :, sl]

            # Scale is already folded into Wq.
            logits = lax.dot_general(
                qh, kh, dimension_numbers=(((2,), (2,)), ((0,), (0,))),
                preferred_element_type=jnp.float32)                 # (B, S, S)

            # Numerically stable, exact softmax.
            m = jnp.max(logits, axis=-1, keepdims=True)
            p = jnp.exp(logits - m)
            p = p / jnp.sum(p, axis=-1, keepdims=True)

            ctx = lax.dot_general(
                p, vh, dimension_numbers=(((2,), (1,)), ((0,), (0,))),
                preferred_element_type=jnp.float32)                 # (B, S, E)

            # Head merge fused into the output projection: each head hits the
            # matching 8-row slice of Wo; summing the partial products equals
            # concat(heads) @ Wo with no lane-axis concatenate.
            wo_h = wo_ref[pl.ds(h * E, E), :]                       # (E, D)
            part = jnp.dot(ctx.reshape(B * S, E), wo_h,
                           preferred_element_type=jnp.float32)      # (B*S, D)
            out_acc = part if out_acc is None else out_acc + part

        o_ref[...] = (out_acc + bo_ref[...]).reshape(B, S, D)

    # Single kernel invocation, no grid: nothing to pipeline at these shapes,
    # so skip the 1-step-grid bookkeeping and bring every operand into VMEM.
    vmem = pl.BlockSpec(memory_space=pltpu.MemorySpace.VMEM)
    return pl.pallas_call(
        kernel,
        out_shape=jax.ShapeDtypeStruct((B, S, D), jnp.float32),
        in_specs=[vmem, vmem, vmem, vmem],
        out_specs=vmem,
    )(x3, w3, wo, bo2)


def reference(query, key, value, params):
    """Plain-JAX reference matching the PyTorch forward (mask=None)."""
    wq, wk, wv, wo, bo = params
    B, S, D = query.shape
    H, E = NUM_HEADS, D // NUM_HEADS

    def split(t):  # (B, S, D) -> (B, H, S, E)
        return t.reshape(B, S, H, E).transpose(0, 2, 1, 3)

    qh, kh, vh = split(query @ wq), split(key @ wk), split(value @ wv)
    logits = jnp.einsum('bhqe,bhke->bhqk', qh, kh) / float(np.sqrt(E))
    p = jax.nn.softmax(logits, axis=-1)
    ctx = jnp.einsum('bhqk,bhke->bhqe', p, vh)
    ctx = ctx.transpose(0, 2, 1, 3).reshape(B, S, D)
    return ctx @ wo + bo


def make_params(key):
    ks = jax.random.split(key, 5)
    f32 = jnp.float32
    wq = 0.05 * jax.random.normal(ks[0], (D_MODEL, D_MODEL), f32)
    wk = 0.05 * jax.random.normal(ks[1], (D_MODEL, D_MODEL), f32)
    wv = 0.05 * jax.random.normal(ks[2], (D_MODEL, D_MODEL), f32)
    wo = 0.05 * jax.random.normal(ks[3], (D_MODEL, D_MODEL), f32)
    bo = 0.05 * jax.random.normal(ks[4], (D_MODEL,), f32)
    return (wq, wk, wv, wo, bo)


if __name__ == "__main__":
    root = jax.random.PRNGKey(0)
    kq, kk, kv, kp = jax.random.split(root, 4)
    query = jax.random.normal(kq, (BATCH, SEQ, D_MODEL), jnp.float32)
    key_t = jax.random.normal(kk, (BATCH, SEQ, D_MODEL), jnp.float32)
    value = jax.random.normal(kv, (BATCH, SEQ, D_MODEL), jnp.float32)
    params = make_params(kp)

    out = multi_head_attention(query, key_t, value, params)
    out = jax.block_until_ready(out)

    ref = reference(query, key_t, value, params)
    np.testing.assert_allclose(np.asarray(out), np.asarray(ref),
                               rtol=1e-5, atol=1e-5)
    print("KERNEL_OK")
</pallas_src>

<mosaic_0001>
module attributes {stable_mosaic.version = 11 : i64} {
  func.func @kernel(%arg0: memref<3x16x32xf32, #tpu.memory_space<vmem>>, %arg1: memref<3x32x32xf32, #tpu.memory_space<vmem>>, %arg2: memref<32x32xf32, #tpu.memory_space<vmem>>, %arg3: memref<1x32xf32, #tpu.memory_space<vmem>>, %arg4: memref<2x8x32xf32, #tpu.memory_space<vmem>>) attributes {dimension_semantics = [], scalar_prefetch = 0 : i64, scratch_operands = 0 : i64, tpu.core_type = #tpu.core_type<tc>} {
    %c0 = arith.constant 0 : index
    %c0_0 = arith.constant 0 : index
    %c0_1 = arith.constant 0 : index
    %0 = vector.load %arg0[%c0, %c0_0, %c0_1] : memref<3x16x32xf32, #tpu.memory_space<vmem>>, vector<3x16x32xf32>
    %c0_2 = arith.constant 0 : index
    %c0_3 = arith.constant 0 : index
    %c0_4 = arith.constant 0 : index
    %1 = vector.load %arg1[%c0_2, %c0_3, %c0_4] : memref<3x32x32xf32, #tpu.memory_space<vmem>>, vector<3x32x32xf32>
    %cst = arith.constant dense<0.000000e+00> : vector<3x16x32xf32>
    %2 = tpu.matmul %0, %1, %cst {dimension_numbers = #tpu.dot_dimension_numbers<[2], [1], [1], [2], [0, 0, 0, 1, 1, 2], [0], [0]>} : vector<3x16x32xf32>, vector<3x32x32xf32>, vector<3x16x32xf32> -> vector<3x16x32xf32>
    %3 = vector.extract_strided_slice %2 {offsets = [0, 0, 0], sizes = [1, 16, 32], strides = [1, 1, 1]} : vector<3x16x32xf32> to vector<1x16x32xf32>
    %4 = vector.shape_cast %3 : vector<1x16x32xf32> to vector<16x32xf32>
    %5 = vector.shape_cast %4 : vector<16x32xf32> to vector<2x8x32xf32>
    %6 = vector.extract_strided_slice %2 {offsets = [1, 0, 0], sizes = [1, 16, 32], strides = [1, 1, 1]} : vector<3x16x32xf32> to vector<1x16x32xf32>
    %7 = vector.shape_cast %6 : vector<1x16x32xf32> to vector<16x32xf32>
    %8 = vector.shape_cast %7 : vector<16x32xf32> to vector<2x8x32xf32>
    %9 = vector.extract_strided_slice %2 {offsets = [2, 0, 0], sizes = [1, 16, 32], strides = [1, 1, 1]} : vector<3x16x32xf32> to vector<1x16x32xf32>
    %10 = vector.shape_cast %9 : vector<1x16x32xf32> to vector<16x32xf32>
    %11 = vector.shape_cast %10 : vector<16x32xf32> to vector<2x8x32xf32>
    %12 = vector.extract_strided_slice %5 {offsets = [0, 0, 0], sizes = [2, 8, 8], strides = [1, 1, 1]} : vector<2x8x32xf32> to vector<2x8x8xf32>
    %13 = vector.extract_strided_slice %8 {offsets = [0, 0, 0], sizes = [2, 8, 8], strides = [1, 1, 1]} : vector<2x8x32xf32> to vector<2x8x8xf32>
    %14 = vector.extract_strided_slice %11 {offsets = [0, 0, 0], sizes = [2, 8, 8], strides = [1, 1, 1]} : vector<2x8x32xf32> to vector<2x8x8xf32>
    %cst_5 = arith.constant dense<0.000000e+00> : vector<2x8x8xf32>
    %15 = tpu.matmul %12, %13, %cst_5 {dimension_numbers = #tpu.dot_dimension_numbers<[2], [2], [1], [1], [0, 0, 0, 1, 1, 1], [0], [0]>} : vector<2x8x8xf32>, vector<2x8x8xf32>, vector<2x8x8xf32> -> vector<2x8x8xf32>
    %cst_6 = arith.constant dense<0xFF800000> : vector<2x8xf32>
    %16 = vector.multi_reduction <maximumf>, %15, %cst_6 [2] : vector<2x8x8xf32> to vector<2x8xf32>
    %17 = vector.shape_cast %16 : vector<2x8xf32> to vector<2x8x1xf32>
    %18 = vector.broadcast %17 : vector<2x8x1xf32> to vector<2x8x8xf32>
    %19 = arith.subf %15, %18 : vector<2x8x8xf32>
    %20 = math.exp %19 : vector<2x8x8xf32>
    %cst_7 = arith.constant dense<0.000000e+00> : vector<2x8xf32>
    %21 = vector.multi_reduction <add>, %20, %cst_7 [2] : vector<2x8x8xf32> to vector<2x8xf32>
    %22 = vector.shape_cast %21 : vector<2x8xf32> to vector<2x8x1xf32>
    %23 = vector.broadcast %22 : vector<2x8x1xf32> to vector<2x8x8xf32>
    %24 = arith.divf %20, %23 : vector<2x8x8xf32>
    %cst_8 = arith.constant dense<0.000000e+00> : vector<2x8x8xf32>
    %25 = tpu.matmul %24, %14, %cst_8 {dimension_numbers = #tpu.dot_dimension_numbers<[2], [1], [1], [2], [0, 0, 0, 1, 1, 2], [0], [0]>} : vector<2x8x8xf32>, vector<2x8x8xf32>, vector<2x8x8xf32> -> vector<2x8x8xf32>
    %c0_9 = arith.constant 0 : index
    %c0_10 = arith.constant 0 : index
    %26 = vector.load %arg2[%c0_9, %c0_10] : memref<32x32xf32, #tpu.memory_space<vmem>>, vector<8x32xf32>
    %27 = vector.shape_cast %25 : vector<2x8x8xf32> to vector<16x8xf32>
    %cst_11 = arith.constant dense<0.000000e+00> : vector<16x32xf32>
    %28 = tpu.matmul %27, %26, %cst_11 {dimension_numbers = #tpu.dot_dimension_numbers<[1], [0], [0], [1], [0, 0, 1, 1], [], []>} : vector<16x8xf32>, vector<8x32xf32>, vector<16x32xf32> -> vector<16x32xf32>
    %29 = vector.extract_strided_slice %5 {offsets = [0, 0, 8], sizes = [2, 8, 8], strides = [1, 1, 1]} : vector<2x8x32xf32> to vector<2x8x8xf32>
    %30 = vector.extract_strided_slice %8 {offsets = [0, 0, 8], sizes = [2, 8, 8], strides = [1, 1, 1]} : vector<2x8x32xf32> to vector<2x8x8xf32>
    %31 = vector.extract_strided_slice %11 {offsets = [0, 0, 8], sizes = [2, 8, 8], strides = [1, 1, 1]} : vector<2x8x32xf32> to vector<2x8x8xf32>
    %cst_12 = arith.constant dense<0.000000e+00> : vector<2x8x8xf32>
    %32 = tpu.matmul %29, %30, %cst_12 {dimension_numbers = #tpu.dot_dimension_numbers<[2], [2], [1], [1], [0, 0, 0, 1, 1, 1], [0], [0]>} : vector<2x8x8xf32>, vector<2x8x8xf32>, vector<2x8x8xf32> -> vector<2x8x8xf32>
    %cst_13 = arith.constant dense<0xFF800000> : vector<2x8xf32>
    %33 = vector.multi_reduction <maximumf>, %32, %cst_13 [2] : vector<2x8x8xf32> to vector<2x8xf32>
    %34 = vector.shape_cast %33 : vector<2x8xf32> to vector<2x8x1xf32>
    %35 = vector.broadcast %34 : vector<2x8x1xf32> to vector<2x8x8xf32>
    %36 = arith.subf %32, %35 : vector<2x8x8xf32>
    %37 = math.exp %36 : vector<2x8x8xf32>
    %cst_14 = arith.constant dense<0.000000e+00> : vector<2x8xf32>
    %38 = vector.multi_reduction <add>, %37, %cst_14 [2] : vector<2x8x8xf32> to vector<2x8xf32>
    %39 = vector.shape_cast %38 : vector<2x8xf32> to vector<2x8x1xf32>
    %40 = vector.broadcast %39 : vector<2x8x1xf32> to vector<2x8x8xf32>
    %41 = arith.divf %37, %40 : vector<2x8x8xf32>
    %cst_15 = arith.constant dense<0.000000e+00> : vector<2x8x8xf32>
    %42 = tpu.matmul %41, %31, %cst_15 {dimension_numbers = #tpu.dot_dimension_numbers<[2], [1], [1], [2], [0, 0, 0, 1, 1, 2], [0], [0]>} : vector<2x8x8xf32>, vector<2x8x8xf32>, vector<2x8x8xf32> -> vector<2x8x8xf32>
    %c8 = arith.constant 8 : index
    %c0_16 = arith.constant 0 : index
    %43 = vector.load %arg2[%c8, %c0_16] : memref<32x32xf32, #tpu.memory_space<vmem>>, vector<8x32xf32>
    %44 = vector.shape_cast %42 : vector<2x8x8xf32> to vector<16x8xf32>
    %cst_17 = arith.constant dense<0.000000e+00> : vector<16x32xf32>
    %45 = tpu.matmul %44, %43, %cst_17 {dimension_numbers = #tpu.dot_dimension_numbers<[1], [0], [0], [1], [0, 0, 1, 1], [], []>} : vector<16x8xf32>, vector<8x32xf32>, vector<16x32xf32> -> vector<16x32xf32>
    %46 = arith.addf %28, %45 : vector<16x32xf32>
    %47 = vector.extract_strided_slice %5 {offsets = [0, 0, 16], sizes = [2, 8, 8], strides = [1, 1, 1]} : vector<2x8x32xf32> to vector<2x8x8xf32>
    %48 = vector.extract_strided_slice %8 {offsets = [0, 0, 16], sizes = [2, 8, 8], strides = [1, 1, 1]} : vector<2x8x32xf32> to vector<2x8x8xf32>
    %49 = vector.extract_strided_slice %11 {offsets = [0, 0, 16], sizes = [2, 8, 8], strides = [1, 1, 1]} : vector<2x8x32xf32> to vector<2x8x8xf32>
    %cst_18 = arith.constant dense<0.000000e+00> : vector<2x8x8xf32>
    %50 = tpu.matmul %47, %48, %cst_18 {dimension_numbers = #tpu.dot_dimension_numbers<[2], [2], [1], [1], [0, 0, 0, 1, 1, 1], [0], [0]>} : vector<2x8x8xf32>, vector<2x8x8xf32>, vector<2x8x8xf32> -> vector<2x8x8xf32>
    %cst_19 = arith.constant dense<0xFF800000> : vector<2x8xf32>
    %51 = vector.multi_reduction <maximumf>, %50, %cst_19 [2] : vector<2x8x8xf32> to vector<2x8xf32>
    %52 = vector.shape_cast %51 : vector<2x8xf32> to vector<2x8x1xf32>
    %53 = vector.broadcast %52 : vector<2x8x1xf32> to vector<2x8x8xf32>
    %54 = arith.subf %50, %53 : vector<2x8x8xf32>
    %55 = math.exp %54 : vector<2x8x8xf32>
    %cst_20 = arith.constant dense<0.000000e+00> : vector<2x8xf32>
    %56 = vector.multi_reduction <add>, %55, %cst_20 [2] : vector<2x8x8xf32> to vector<2x8xf32>
    %57 = vector.shape_cast %56 : vector<2x8xf32> to vector<2x8x1xf32>
    %58 = vector.broadcast %57 : vector<2x8x1xf32> to vector<2x8x8xf32>
    %59 = arith.divf %55, %58 : vector<2x8x8xf32>
    %cst_21 = arith.constant dense<0.000000e+00> : vector<2x8x8xf32>
    %60 = tpu.matmul %59, %49, %cst_21 {dimension_numbers = #tpu.dot_dimension_numbers<[2], [1], [1], [2], [0, 0, 0, 1, 1, 2], [0], [0]>} : vector<2x8x8xf32>, vector<2x8x8xf32>, vector<2x8x8xf32> -> vector<2x8x8xf32>
    %c16 = arith.constant 16 : index
    %c0_22 = arith.constant 0 : index
    %61 = vector.load %arg2[%c16, %c0_22] : memref<32x32xf32, #tpu.memory_space<vmem>>, vector<8x32xf32>
    %62 = vector.shape_cast %60 : vector<2x8x8xf32> to vector<16x8xf32>
    %cst_23 = arith.constant dense<0.000000e+00> : vector<16x32xf32>
    %63 = tpu.matmul %62, %61, %cst_23 {dimension_numbers = #tpu.dot_dimension_numbers<[1], [0], [0], [1], [0, 0, 1, 1], [], []>} : vector<16x8xf32>, vector<8x32xf32>, vector<16x32xf32> -> vector<16x32xf32>
    %64 = arith.addf %46, %63 : vector<16x32xf32>
    %65 = vector.extract_strided_slice %5 {offsets = [0, 0, 24], sizes = [2, 8, 8], strides = [1, 1, 1]} : vector<2x8x32xf32> to vector<2x8x8xf32>
    %66 = vector.extract_strided_slice %8 {offsets = [0, 0, 24], sizes = [2, 8, 8], strides = [1, 1, 1]} : vector<2x8x32xf32> to vector<2x8x8xf32>
    %67 = vector.extract_strided_slice %11 {offsets = [0, 0, 24], sizes = [2, 8, 8], strides = [1, 1, 1]} : vector<2x8x32xf32> to vector<2x8x8xf32>
    %cst_24 = arith.constant dense<0.000000e+00> : vector<2x8x8xf32>
    %68 = tpu.matmul %65, %66, %cst_24 {dimension_numbers = #tpu.dot_dimension_numbers<[2], [2], [1], [1], [0, 0, 0, 1, 1, 1], [0], [0]>} : vector<2x8x8xf32>, vector<2x8x8xf32>, vector<2x8x8xf32> -> vector<2x8x8xf32>
    %cst_25 = arith.constant dense<0xFF800000> : vector<2x8xf32>
    %69 = vector.multi_reduction <maximumf>, %68, %cst_25 [2] : vector<2x8x8xf32> to vector<2x8xf32>
    %70 = vector.shape_cast %69 : vector<2x8xf32> to vector<2x8x1xf32>
    %71 = vector.broadcast %70 : vector<2x8x1xf32> to vector<2x8x8xf32>
    %72 = arith.subf %68, %71 : vector<2x8x8xf32>
    %73 = math.exp %72 : vector<2x8x8xf32>
    %cst_26 = arith.constant dense<0.000000e+00> : vector<2x8xf32>
    %74 = vector.multi_reduction <add>, %73, %cst_26 [2] : vector<2x8x8xf32> to vector<2x8xf32>
    %75 = vector.shape_cast %74 : vector<2x8xf32> to vector<2x8x1xf32>
    %76 = vector.broadcast %75 : vector<2x8x1xf32> to vector<2x8x8xf32>
    %77 = arith.divf %73, %76 : vector<2x8x8xf32>
    %cst_27 = arith.constant dense<0.000000e+00> : vector<2x8x8xf32>
    %78 = tpu.matmul %77, %67, %cst_27 {dimension_numbers = #tpu.dot_dimension_numbers<[2], [1], [1], [2], [0, 0, 0, 1, 1, 2], [0], [0]>} : vector<2x8x8xf32>, vector<2x8x8xf32>, vector<2x8x8xf32> -> vector<2x8x8xf32>
    %c24 = arith.constant 24 : index
    %c0_28 = arith.constant 0 : index
    %79 = vector.load %arg2[%c24, %c0_28] : memref<32x32xf32, #tpu.memory_space<vmem>>, vector<8x32xf32>
    %80 = vector.shape_cast %78 : vector<2x8x8xf32> to vector<16x8xf32>
    %cst_29 = arith.constant dense<0.000000e+00> : vector<16x32xf32>
    %81 = tpu.matmul %80, %79, %cst_29 {dimension_numbers = #tpu.dot_dimension_numbers<[1], [0], [0], [1], [0, 0, 1, 1], [], []>} : vector<16x8xf32>, vector<8x32xf32>, vector<16x32xf32> -> vector<16x32xf32>
    %82 = arith.addf %64, %81 : vector<16x32xf32>
    %c0_30 = arith.constant 0 : index
    %c0_31 = arith.constant 0 : index
    %83 = vector.load %arg3[%c0_30, %c0_31] : memref<1x32xf32, #tpu.memory_space<vmem>>, vector<1x32xf32>
    %84 = vector.broadcast %83 : vector<1x32xf32> to vector<16x32xf32>
    %85 = arith.addf %82, %84 : vector<16x32xf32>
    %86 = vector.shape_cast %85 : vector<16x32xf32> to vector<2x8x32xf32>
    %c0_32 = arith.constant 0 : index
    %c0_33 = arith.constant 0 : index
    %c0_34 = arith.constant 0 : index
    %87 = vector.load %arg4[%c0_32, %c0_33, %c0_34] : memref<2x8x32xf32, #tpu.memory_space<vmem>>, vector<2x8x32xf32>
    tpu.vector_store %arg4[%c0_32, %c0_33, %c0_34], %86 {strides = array<i32>} : memref<2x8x32xf32, #tpu.memory_space<vmem>>, vector<2x8x32xf32>,
    return
  }
}

</mosaic_0001>

<bundles_post_ra>
// kernel: tpu_custom_call.1
= control target key start
LH: loop header
LB: loop body
LE: loop exit
PB: predicated region body
PF: predicated region fallthrough
CT: control target
= control target key end

     0   :  { %9 = vsyncpa [#allocation3], 0  ;;  %s2666_s0 = inlined_call_operand.hbm [shape: f32[3,16,32], index: 0, kind: input, shape index: {}]   ;;  %s2667_s1 = inlined_call_operand.hbm [shape: f32[3,32,32], index: 1, kind: input, shape index: {}]   ;;  %s2668_s2 = inlined_call_operand.hbm [shape: f32[32,32], index: 2, kind: input, shape index: {}]   ;;  %s2669_s3 = inlined_call_operand.vmem [shape: f32[1,32], index: 3, kind: input, shape index: {}]   ;;  %s2670_s4 = inlined_call_operand.hbm [shape: f32[2,8,32], index: 4, kind: output, shape index: {}]  }
   0x1   :  { %10 = vsyncpa [#allocation6], 0 }
   0x2   :  { %11 = vsyncpa [#allocation4], 0  ;;  %s2396_s15 = smov [#allocation5]   ;;  %s2397_s17 = smov [#allocation2]  }
   0x3   :  { %s29_s16 = sshll.u32 %s2396_s15, 4  ;;  %s17_s18 = sshll.u32 %s2397_s17, 4  ;;  %s30_s16 = int_to_ptr.vmem [resolvable:$true] %s29_s16  ;;  %s2432_s18 = int_to_ptr.vmem [resolvable:$true] %s17_s18 }
   0x4   :  { %s2302_s21 = scalar_lea.hbm %s2667_s1, 1536 }
   0x5   :  { %p2303_p0 = scmp.ne.s32.totalorder %s2667_s1, %s2302_s21  ;;  %p2306_p1 = scmp.lt.u32.totalorder %s2302_s21, %s2667_s1 }
   0x7   :  { %p2308_p2 = pnand %p2306_p1, %p2303_p0 }
   0x9   :  { %2311 = shalt.err (!%p2308_p2)
}
   0xa   :  { %s2312_s26 = scalar_lea.vmem %s30_s16, 1536  ;;  %p2317_p4 = scmp.lt.s32.totalorder %s30_s16, %s30_s16 }
   0xb   :  { %p2313_p3 = scmp.ne.s32.totalorder %s30_s16, %s2312_s26  ;;  %p2318_p5 = scmp.lt.s32.totalorder %s2312_s26, %s2312_s26 }
   0xd   :  { %p2319_p6 = por %p2318_p5, %p2317_p4 }
   0xf   :  { %p2320_p7 = pnand %p2319_p6, %p2313_p3 }
  0x11   :  { %2323 = shalt.err (!%p2320_p7)
}
  0x12   :  { %s2398_s27 = smov 128   ;;  %s2399_s28 = smov 8  }
  0x13   :  { %35 = dma.hbm_to_vmem [thread:$0]  %s2667_s1, 1536, %s30_s16, [#allocation6], %s2398_s27, %s2398_s27, %s2399_s28  }
  0x14   :  { %s2324_s7 = scalar_lea.hbm %s2666_s0, 768 }
  0x15   :  { %p2325_p8 = scmp.ne.s32.totalorder %s2666_s0, %s2324_s7  ;;  %p2328_p9 = scmp.lt.u32.totalorder %s2324_s7, %s2666_s0 }
  0x17   :  { %p2330_p10 = pnand %p2328_p9, %p2325_p8 }
  0x19   :  { %2333 = shalt.err (!%p2330_p10)
}
  0x1a   :  { %s2334_s12 = scalar_lea.vmem %s2432_s18, 768  ;;  %p2339_p12 = scmp.lt.s32.totalorder %s2432_s18, %s2432_s18 }
  0x1b   :  { %p2335_p11 = scmp.ne.s32.totalorder %s2432_s18, %s2334_s12  ;;  %p2340_p13 = scmp.lt.s32.totalorder %s2334_s12, %s2334_s12 }
  0x1d   :  { %p2341_p0 = por %p2340_p13, %p2339_p12 }
  0x1f   :  { %p2342_p1 = pnand %p2341_p0, %p2335_p11 }
  0x21   :  { %2345 = shalt.err (!%p2342_p1)
}
  0x22   :  { %23 = dma.hbm_to_vmem [thread:$0]  %s2666_s0, 768, %s2432_s18, [#allocation3], %s2398_s27, %s2398_s27, %s2399_s28  }
  0x23   :  { %s2400_s14 = smov [#allocation7]   ;;  %s2346_s19 = scalar_lea.hbm %s2668_s2, 512 }
  0x24   :  { %s41_s15 = sshll.u32 %s2400_s14, 4  ;;  %p2347_p2 = scmp.ne.s32.totalorder %s2668_s2, %s2346_s19  ;;  %s42_s15 = int_to_ptr.vmem [resolvable:$true] %s41_s15 }
  0x25   :  { %p2350_p3 = scmp.lt.u32.totalorder %s2346_s19, %s2668_s2 }
  0x27   :  { %p2352_p4 = pnand %p2350_p3, %p2347_p2 }
  0x29   :  { %2355 = shalt.err (!%p2352_p4)
}
  0x2a   :  { %s2356_s24 = scalar_lea.vmem %s42_s15, 512  ;;  %p2361_p6 = scmp.lt.s32.totalorder %s42_s15, %s42_s15 }
  0x2b   :  { %p2357_p5 = scmp.ne.s32.totalorder %s42_s15, %s2356_s24  ;;  %p2362_p7 = scmp.lt.s32.totalorder %s2356_s24, %s2356_s24 }
  0x2d   :  { %p2363_p8 = por %p2362_p7, %p2361_p6 }
  0x2f   :  { %p2364_p9 = pnand %p2363_p8, %p2357_p5 }
  0x31   :  { %2367 = shalt.err (!%p2364_p9)
}
  0x32   :  { %47 = dma.hbm_to_vmem [thread:$0]  %s2668_s2, 512, %s42_s15, [#allocation6], %s2398_s27, %s2398_s27, %s2399_s28  }
  0x33   :  { %2390 = dma.done.wait [#allocation3], 768  }
  0x34   :  { %2391 = vsyncadd [#allocation3], 4294966528 }
  0x35   :  { %2392 = dma.done.wait [#allocation6], 2048  }
  0x36   :  { %2393 = vsyncadd [#allocation6], 4294965248  ;;  %v69_v0 = vld [vmem:[#allocation5 + $0x20] sm:$0xff]  ;;  %v70_v1 = vld [vmem:[#allocation5 + $0x28] sm:$0xff]  ;;  %vm77_vm0 = vcmask 261120   ;;  %v2401_v16 = vmov 0.0  }
  0x37   :  { %v65_v2 = vld [vmem:[#allocation5] sm:$0xff]  ;;  %v2237_v3 = vpack.c.bf16 %v70_v1, %v69_v0  ;;  %v66_v4 = vld [vmem:[#allocation5 + $0x8] sm:$0xff]  ;;  %v71_v5 = vld [vmem:[#allocation5 + $0x30] sm:$0xff]  ;;  %vm2402_vm1 = vmmov 0   ;;  %vm321_vm2 = vcmask 64512   ;;  %s2403_s2 = smov 120  }
  0x38   :  { %v72_v6 = vld [vmem:[#allocation5 + $0x38] sm:$0xff]  ;;  %v2229_v7 = vpack.c.bf16 %v66_v4, %v65_v2  ;;  %v67_v9 = vld [vmem:[#allocation5 + $0x10] sm:$0xff]  ;;  %v61_v11 = vld [vmem:[#allocation2 + $0x10] sm:$0xff]  ;;  %s2404_s25 = smov 112   ;;  %s2405_s26 = smov 104  }
  0x39   :  { %v2241_v8 = vpack.c.bf16 %v72_v6, %v71_v5  ;;  %v68_v10 = vld [vmem:[#allocation5 + $0x18] sm:$0xff]  ;;  %2238 = vmatprep.subr.bf16.mxu1 %v2237_v3  ;;  %2115 = vmatprep.mubr.msk.f32.mxu1 %vm77_vm0, %v61_v11  ;;  %v59_v13 = vld [vmem:[#allocation2] sm:$0xff]  ;;  %v62_v14 = vld [vmem:[#allocation2 + $0x18] sm:$0xff]  ;;  %s2406_s5 = smov [#allocation8]  }
  0x3a   :  { %v2233_v12 = vpack.c.bf16 %v68_v10, %v67_v9  ;;  %2240 = vmatpush3.bf16.msra.mxu1 %v2237_v3  ;;  %2230 = vmatprep.subr.bf16.mxu0 %v2229_v7  ;;  %v60_v15 = vld [vmem:[#allocation2 + $0x8] sm:$0xff]  ;;  %v73_v21 = vld [vmem:[#allocation5 + $0x40] sm:$0xff]  ;;  %v74_v22 = vld [vmem:[#allocation5 + $0x48] sm:$0xff]  ;;  %s1982_s6 = sshll.u32 %s2406_s5, 4  ;;  %s1983_s6 = int_to_ptr.vmem [resolvable:$true] %s1982_s6 }
  0x3b   :  { %2232 = vmatpush3.bf16.msra.mxu0 %v2229_v7  ;;  %2242 = vmatprep.subr.bf16.mxu1 %v2241_v8  ;;  %v75_v23 = vld [vmem:[#allocation5 + $0x50] sm:$0xff]  ;;  %v2245_v24 = vpack.c.bf16 %v74_v22, %v73_v21  ;;  %v76_v25 = vld [vmem:[#allocation5 + $0x58] sm:$0xff]  ;;  %s2368_s7 = scalar_lea.vmem %s1983_s6, 256  ;;  %p2373_p11 = scmp.lt.s32.totalorder %s1983_s6, %s1983_s6 }
  0x3c   :  { %2234 = vmatprep.subr.bf16.mxu0 %v2233_v12  ;;  %2104 = vmatprep.mubr.msk.f32.mxu0 %vm77_vm0, %v59_v13  ;;  %v63_v26 = vld [vmem:[#allocation2 + $0x20] sm:$0xff]  ;;  %v2249_v27 = vpack.c.bf16 %v76_v25, %v75_v23  ;;  %v64_v28 = vld [vmem:[#allocation2 + $0x28] sm:$0xff]  ;;  %p2369_p10 = scmp.ne.s32.totalorder %s1983_s6, %s2368_s7  ;;  %p2374_p12 = scmp.lt.s32.totalorder %s2368_s7, %s2368_s7 }
  0x3e   :  { %2244 = vmatpush3.bf16.msra.mxu1 %v2241_v8  ;;  %p2375_p13 = por %p2374_p12, %p2373_p11 }
  0x3f   :  { %2236 = vmatpush3.bf16.msra.mxu0 %v2233_v12  ;;  %2129 = vmatprep.subr.mxu1 %v2401_v16 }
  0x40   :  { %2246 = vmatprep.subr.bf16.mxu0 %v2245_v24  ;;  %p2376_p0 = pnand %p2375_p13, %p2369_p10 }
  0x41   :  { %2116 = vmatmul.mubr.msk.f32.vlgmr.msra.gmra.mrb[0].mxu1 %vm77_vm0, %v62_v14 }
  0x42   :  { %2105 = vmatmul.mubr.msk.f32.vlgmr.msra.gmra.mrb[0].mxu0 %vm77_vm0, %v60_v15  ;;  %2131 = vmatprep.mubr.msk.f32.mxu1 %vm2402_vm1, %v2401_v16 }
  0x43   :  { %2126 = vmatprep.mubr.msk.f32.mxu0 %vm77_vm0, %v63_v26  ;;  %2248 = vmatpush3.bf16.msra.mxu0 %v2245_v24 }
  0x44   :  { %2250 = vmatprep.subr.bf16.mxu0 %v2249_v27 }
  0x47   :  { %2252 = vmatpush3.bf16.msra.mxu0 %v2249_v27 }
  0x48   :  { %2149 = vmatprep.subr.mxu0 %v2401_v16 }
  0x4a   :  { %2127 = vmatmul.mubr.msk.f32.vlgmr.msra.gmra.mrb[2].mxu0 %vm77_vm0, %v64_v28 }
  0x4b   :  { %2151 = vmatprep.mubr.msk.f32.mxu0 %vm2402_vm1, %v2401_v16 }
 0x114   :  { %v2491_v17 = vpop.f32.mrb[0].mxu1 }
 0x115   :  { %v2493_v18 = vpop.f32.mrb[1].mxu1  ;;  %v2495_v19 = vpop.f32.mrb[0].mxu0 }
 0x116   :  { %2130 = vmatpush3.xpose.msk.msra.mxu1 %vm321_vm2, %v2493_v18  ;;  %v2499_v20 = vpop.f32.mrb[1].mxu0 }
 0x117   :  { %2134 = vmatprep.subr.mxu1 %v2401_v16 }
 0x119   :  { %2132 = vmatmul.mubr.msk.f32.vlgmr.msra.gmra.mrb[2].mxu1 %vm321_vm2, %v2499_v20 }
 0x11a   :  { %2135 = vmatpush3.xpose.msk.msra.mxu1 %vm321_vm2, %v2491_v17  ;;  %2136 = vmatprep.mubr.msk.f32.mxu1 %vm2402_vm1, %v2401_v16 }
 0x11b   :  { %2139 = vmatprep.subr.mxu1 %v2401_v16 }
 0x11d   :  { %2137 = vmatmul.mubr.msk.f32.vlgmr.msra.gmra.mrb[4].mxu1 %vm321_vm2, %v2495_v19  ;;  %v2526_v45 = vpop.f32.mrb[2].mxu0 }
 0x11e   :  { %2141 = vmatprep.mubr.msk.f32.mxu1 %vm2402_vm1, %v2401_v16  ;;  %v2528_v46 = vpop.f32.mrb[3].mxu0 }
 0x11f   :  { %2140 = vmatpush3.msra.mxu1 %v2528_v46 }
 0x120   :  { %2144 = vmatprep.subr.mxu1 %v2401_v16 }
 0x1ec   :  { %v394_v29 = vpop.f32.mrb[2].mxu1 }
 0x1ed   :  { %v2133_v30 = vpop.f32.mrb[3].mxu1  ;;  %v474_v31 = vsel %vm321_vm2, %v394_v29, -inf }
 0x1ee   :  { %475 = vmax.xlane.f32.xlu0 %v474_v31 }
 0x1f0   :  { %v470_v32 = vpop.f32.mrb[4].mxu1 }
 0x1f1   :  { %v2138_v33 = vpop.f32.mrb[5].mxu1  ;;  %v477_v34 = vsel %vm321_vm2, %v470_v32, -inf }
 0x1f2   :  { %478 = vmax.xlane.f32.xlu0 %v477_v34 }
 0x208   :  { %723 = vrot.lane.b32.xlu0 %v2491_v17, %s2403_s2 }
 0x27b   :  { %v476_v35 = vpop.xlane.xlu0 %475 }
 0x27c   :  { %v480_v36 = vsub.f32 %v394_v29, %v476_v35 }
 0x27e   :  { %v482_v37 = vmul.f32 1.442695, %v480_v36  ;;  %v975_v36 = vld [vmem:[#allocation7 + $0x8] sm:$0xff] }
 0x27f   :  { %v479_v38 = vpop.xlane.xlu0 %478 }
 0x280   :  { %2270 = vpow2.f32 %v482_v37  ;;  %v481_v39 = vsub.f32 %v470_v32, %v479_v38  ;;  %v642_v37 = vld [vmem:[#allocation7] sm:$0xff] }
 0x282   :  { %v484_v40 = vmul.f32 1.442695, %v481_v39 }
 0x283   :  { %v724_v56 = vpop.permute.xlu0 %723 }
 0x284   :  { %2272 = vpow2.f32 %v484_v40 }
 0x28a   :  { %v2271_v41 = vpop.eup %2270 }
 0x28b   :  { %v486_v42 = vsel %vm321_vm2, %v2271_v41, 0.0 }
 0x28c   :  { %487 = vadd.xlane.f32.xlu1 %v486_v42 }
 0x28e   :  { %v2273_v43 = vpop.eup %2272 }
 0x28f   :  { %v489_v44 = vsel %vm321_vm2, %v2273_v43, 0.0 }
 0x290   :  { %490 = vadd.xlane.f32.xlu1 %v489_v44 }
 0x2a1   :  { %721 = vrot.lane.b32.xlu1 %v2495_v19, %s2403_s2 }
 0x2a5   :  { %645 = vrot.lane.b32.xlu1 %v2493_v18, %s2403_s2 }
 0x2a9   :  { %643 = vrot.lane.b32.xlu1 %v2499_v20, %s2403_s2 }
 0x2ad   :  { %1140 = vrot.lane.b32.xlu1 %v2493_v18, %s2404_s25 }
 0x319   :  { %v488_v47 = vpop.xlane.xlu1 %487 }
 0x31a   :  { %2274 = vrcp.f32 %v488_v47 }
 0x31d   :  { %v491_v48 = vpop.xlane.xlu1 %490 }
 0x31e   :  { %2276 = vrcp.f32 %v491_v48 }
 0x321   :  { %v722_v49 = vpop.permute.xlu1 %721 }
 0x324   :  { %v2275_v50 = vpop.eup %2274 }
 0x325   :  { %v493_v51 = vmul.f32 %v2275_v50, %v2271_v41  ;;  %v646_v52 = vpop.permute.xlu1 %645 }
 0x326   :  { %2150 = vmatpush3.xpose.msk.msra.mxu0 %vm321_vm2, %v646_v52 }
 0x327   :  { %2142 = vmatmul.mubr.msk.f32.vlgmr.msra.gmra.mrb[6].mxu1 %vm321_vm2, %v493_v51  ;;  %2159 = vmatprep.subr.mxu0 %v2401_v16 }
 0x328   :  { %v2277_v53 = vpop.eup %2276  ;;  %2145 = vmatpush3.msra.mxu1 %v2526_v45  ;;  %2146 = vmatprep.mubr.msk.f32.mxu1 %vm2402_vm1, %v2401_v16 }
 0x329   :  { %v495_v54 = vmul.f32 %v2277_v53, %v2273_v43  ;;  %v644_v55 = vpop.permute.xlu1 %643  ;;  %2154 = vmatprep.subr.mxu1 %v2401_v16  ;;  %v1468_v53 = vld [vmem:[#allocation7 + $0x10] sm:$0xff] }
 0x32a   :  { %2152 = vmatmul.mubr.msk.f32.vlgmr.msra.gmra.mrb[4].mxu0 %vm321_vm2, %v644_v55 }
 0x32b   :  { %2147 = vmatmul.mubr.msk.f32.vlgmr.msra.gmra.mrb[8].mxu1 %vm321_vm2, %v495_v54  ;;  %2161 = vmatprep.mubr.msk.f32.mxu0 %vm2402_vm1, %v2401_v16 }
 0x32c   :  { %2156 = vmatprep.mubr.msk.f32.mxu1 %vm2402_vm1, %v2401_v16 }
 0x32d   :  { %v1141_v9 = vpop.permute.xlu1 %1140 }
 0x32f   :  { %2155 = vmatpush3.xpose.msk.msra.mxu1 %vm321_vm2, %v724_v56 }
 0x330   :  { %2164 = vmatprep.subr.mxu1 %v2401_v16 }
 0x332   :  { %2157 = vmatmul.mubr.msk.f32.vlgmr.msra.gmra.mrb[10].mxu1 %vm321_vm2, %v722_v49 }
 0x333   :  { %2166 = vmatprep.mubr.msk.f32.mxu1 %vm2402_vm1, %v2401_v16 }
 0x3fa   :  { %v2556_v57 = vpop.f32.mrb[6].mxu1 }
 0x3fb   :  { %v2143_v58 = vpop.f32.mrb[7].mxu1 }
 0x3fd   :  { %v717_v59 = vpop.f32.mrb[4].mxu0 }
 0x3fe   :  { %v2558_v60 = vpop.f32.mrb[8].mxu1  ;;  %v2153_v61 = vpop.f32.mrb[5].mxu0  ;;  %v799_v8 = vsel %vm321_vm2, %v717_v59, -inf }
 0x3ff   :  { %v2148_v62 = vpop.f32.mrb[9].mxu1 }
 0x405   :  { %v795_v63 = vpop.f32.mrb[10].mxu1 }
 0x406   :  { %v2158_v0 = vpop.f32.mrb[11].mxu1  ;;  %v802_v1 = vsel %vm321_vm2, %v795_v63, -inf }
 0x407   :  { %803 = vmax.xlane.f32.xlu0 %v802_v1 }
 0x41d   :  { %899 = vrot.lane.b32.xlu0 %v2526_v45, %s2403_s2 }
 0x421   :  { %1138 = vrot.lane.b32.xlu0 %v2499_v20, %s2404_s25 }
 0x425   :  { %1216 = vrot.lane.b32.xlu0 %v2495_v19, %s2404_s25 }
 0x494   :  { %v804_v2 = vpop.xlane.xlu0 %803 }
 0x495   :  { %v806_v3 = vsub.f32 %v795_v63, %v804_v2 }
 0x497   :  { %v809_v4 = vmul.f32 1.442695, %v806_v3 }
 0x498   :  { %v900_v5 = vpop.permute.xlu0 %899 }
 0x499   :  { %2278 = vpow2.f32 %v809_v4  ;;  %2165 = vmatpush3.msra.mxu1 %v900_v5 }
 0x49a   :  { %2179 = vmatprep.subr.mxu1 %v2401_v16 }
 0x49c   :  { %v1139_v13 = vpop.permute.xlu0 %1138 }
 0x4a0   :  { %v1217_v15 = vpop.permute.xlu0 %1216 }
 0x4a3   :  { %v2279_v6 = vpop.eup %2278 }
 0x4a4   :  { %v814_v7 = vsel %vm321_vm2, %v2279_v6, 0.0 }
 0x4a5   :  { %815 = vadd.xlane.f32.xlu1 %v814_v7 }
 0x4b6   :  { %1218 = vrot.lane.b32.xlu1 %v2491_v17, %s2404_s25 }
 0x4da   :  { %800 = vmax.xlane.f32.xlu1 %v799_v8 }
 0x532   :  { %v816_v10 = vpop.xlane.xlu1 %815 }
 0x533   :  { %2280 = vrcp.f32 %v816_v10 }
 0x536   :  { %v1219_v14 = vpop.permute.xlu1 %1218 }
 0x53d   :  { %v2281_v11 = vpop.eup %2280 }
 0x53e   :  { %v820_v12 = vmul.f32 %v2281_v11, %v2279_v6 }
 0x540   :  { %2167 = vmatmul.mubr.msk.f32.vlgmr.msra.gmra.mrb[12].mxu1 %vm321_vm2, %v820_v12 }
 0x541   :  { %2180 = vmatpush3.xpose.msk.msra.mxu1 %vm321_vm2, %v1141_v9  ;;  %2181 = vmatprep.mubr.msk.f32.mxu1 %vm2402_vm1, %v2401_v16 }
 0x542   :  { %2184 = vmatprep.subr.mxu1 %v2401_v16 }
 0x544   :  { %2182 = vmatmul.mubr.msk.f32.vlgmr.msra.gmra.mrb[14].mxu1 %vm321_vm2, %v1139_v13 }
 0x545   :  { %2185 = vmatpush3.xpose.msk.msra.mxu1 %vm321_vm2, %v1219_v14  ;;  %2186 = vmatprep.mubr.msk.f32.mxu1 %vm2402_vm1, %v2401_v16 }
 0x546   :  { %2194 = vmatprep.subr.mxu1 %v2401_v16 }
 0x548   :  { %2187 = vmatmul.mubr.msk.f32.vlgmr.msra.gmra.mrb[16].mxu1 %vm321_vm2, %v1217_v15 }
 0x549   :  { %2196 = vmatprep.mubr.msk.f32.mxu1 %vm2402_vm1, %v2401_v16 }
 0x567   :  { %v801_v21 = vpop.xlane.xlu1 %800 }
 0x568   :  { %v805_v22 = vsub.f32 %v717_v59, %v801_v21 }
 0x56a   :  { %v807_v23 = vmul.f32 1.442695, %v805_v22 }
 0x56c   :  { %2282 = vpow2.f32 %v807_v23 }
 0x576   :  { %v2283_v24 = vpop.eup %2282 }
 0x577   :  { %v811_v25 = vsel %vm321_vm2, %v2283_v24, 0.0 }
 0x578   :  { %812 = vadd.xlane.f32.xlu0 %v811_v25 }
 0x58e   :  { %822 = vrot.lane.b32.xlu0 %v2528_v46, %s2403_s2 }
 0x592   :  { %1392 = vrot.lane.b32.xlu0 %v2526_v45, %s2404_s25 }
 0x596   :  { %1554 = vrot.lane.b32.xlu0 %v2493_v18, %s2405_s26 }
 0x59a   :  { %1632 = vrot.lane.b32.xlu0 %v2491_v17, %s2405_s26 }
 0x59e   :  { %1552 = vrot.lane.b32.xlu0 %v2499_v20, %s2405_s26 }
 0x605   :  { %v813_v26 = vpop.xlane.xlu0 %812 }
 0x606   :  { %2284 = vrcp.f32 %v813_v26 }
 0x609   :  { %v823_v27 = vpop.permute.xlu0 %822 }
 0x60a   :  { %2160 = vmatpush3.msra.mxu0 %v823_v27 }
 0x60b   :  { %2169 = vmatprep.subr.mxu0 %v975_v36 }
 0x60d   :  { %v1393_v28 = vpop.permute.xlu0 %1392 }
 0x60e   :  { %2195 = vmatpush3.msra.mxu1 %v1393_v28 }
 0x60f   :  { %2204 = vmatprep.subr.mxu1 %v2401_v16 }
 0x610   :  { %v2285_v29 = vpop.eup %2284 }
 0x611   :  { %v818_v30 = vmul.f32 %v2285_v29, %v2283_v24  ;;  %v1555_v55 = vpop.permute.xlu0 %1554 }
 0x613   :  { %2162 = vmatmul.mubr.msk.f32.vlgmr.msra.gmra.mrb[6].mxu0 %vm321_vm2, %v818_v30  ;;  %v971_v31 = vpop.f32.mrb[12].mxu1  ;;  %v1882_v30 = vld [vmem:[#allocation7 + $0x18] sm:$0xff] }
 0x614   :  { %v2168_v18 = vpop.f32.mrb[13].mxu1  ;;  %2170 = vmatpush3.msra.mxu0 %v975_v36 }
 0x615   :  { %2174 = vmatprep.subr.mxu0 %v642_v37  ;;  %v1633_v59 = vpop.permute.xlu0 %1632 }
 0x617   :  { %v1212_v32 = vpop.f32.mrb[14].mxu1 }
 0x618   :  { %v2183_v33 = vpop.f32.mrb[15].mxu1  ;;  %v1294_v17 = vsel %vm321_vm2, %v1212_v32, -inf }
 0x619   :  { %1295 = vmax.xlane.f32.xlu1 %v1294_v17  ;;  %v1553_v61 = vpop.permute.xlu0 %1552  ;;  %v2033_v33 = vld [vmem:[%s2669_s3] ss:$0 sm:$0xff] }
 0x61b   :  { %v1290_v20 = vpop.f32.mrb[16].mxu1 }
 0x61c   :  { %v2188_v34 = vpop.f32.mrb[17].mxu1  ;;  %v1297_v35 = vsel %vm321_vm2, %v1290_v20, -inf }
 0x61d   :  { %1298 = vmax.xlane.f32.xlu1 %v1297_v35 }
 0x6a6   :  { %v1296_v38 = vpop.xlane.xlu1 %1295 }
 0x6a7   :  { %v1300_v39 = vsub.f32 %v1212_v32, %v1296_v38 }
 0x6a9   :  { %v1302_v40 = vmul.f32 1.442695, %v1300_v39 }
 0x6aa   :  { %v1299_v41 = vpop.xlane.xlu1 %1298 }
 0x6ab   :  { %2286 = vpow2.f32 %v1302_v40  ;;  %v1301_v42 = vsub.f32 %v1290_v20, %v1299_v41 }
 0x6ad   :  { %v1304_v43 = vmul.f32 1.442695, %v1301_v42 }
 0x6af   :  { %2288 = vpow2.f32 %v1304_v43 }
 0x6b5   :  { %v2287_v44 = vpop.eup %2286 }
 0x6b6   :  { %v1306_v47 = vsel %vm321_vm2, %v2287_v44, 0.0 }
 0x6b7   :  { %1307 = vadd.xlane.f32.xlu1 %v1306_v47 }
 0x6b9   :  { %v2289_v48 = vpop.eup %2288 }
 0x6ba   :  { %v1309_v49 = vsel %vm321_vm2, %v2289_v48, 0.0 }
 0x6bb   :  { %1310 = vadd.xlane.f32.xlu1 %v1309_v49 }
 0x6cc   :  { %1316 = vrot.lane.b32.xlu1 %v2528_v46, %s2404_s25 }
 0x6d0   :  { %1630 = vrot.lane.b32.xlu1 %v2495_v19, %s2405_s26 }
 0x6e6   :  { %v894_v50 = vpop.f32.mrb[6].mxu0 }
 0x6e7   :  { %v2163_v51 = vpop.f32.mrb[7].mxu0  ;;  %2171 = vmatprep.mubr.msk.f32.mxu0 %vm321_vm2, %v894_v50 }
 0x6e8   :  { %2172 = vmatmul.mubr.msk.f32.vlgmr.msra.gmra.mrb[8].mxu0 %vm321_vm2, %v971_v31 }
 0x6e9   :  { %2176 = vmatprep.mubr.msk.f32.mxu0 %vm321_vm2, %v2556_v57  ;;  %2175 = vmatpush3.msra.mxu0 %v642_v37 }
 0x6ea   :  { %2189 = vmatprep.subr.mxu0 %v2401_v16 }
 0x6f0   :  { %2177 = vmatmul.mubr.msk.f32.vlgmr.msra.gmra.mrb[8].mxu0 %vm321_vm2, %v2558_v60 }
 0x6f1   :  { %2191 = vmatprep.mubr.msk.f32.mxu0 %vm2402_vm1, %v2401_v16 }
 0x744   :  { %v1308_v52 = vpop.xlane.xlu1 %1307 }
 0x745   :  { %2290 = vrcp.f32 %v1308_v52 }
 0x748   :  { %v1311_v19 = vpop.xlane.xlu1 %1310 }
 0x749   :  { %2292 = vrcp.f32 %v1311_v19 }
 0x74c   :  { %v1317_v54 = vpop.permute.xlu1 %1316 }
 0x74d   :  { %2190 = vmatpush3.msra.mxu0 %v1317_v54 }
 0x74e   :  { %2199 = vmatprep.subr.mxu0 %v1468_v53 }
 0x74f   :  { %v2291_v56 = vpop.eup %2290 }
 0x750   :  { %v1313_v57 = vmul.f32 %v2291_v56, %v2287_v44  ;;  %v1631_v2 = vpop.permute.xlu1 %1630 }
 0x752   :  { %2192 = vmatmul.mubr.msk.f32.vlgmr.msra.gmra.mrb[10].mxu0 %vm321_vm2, %v1313_v57 }
 0x753   :  { %v2293_v58 = vpop.eup %2292  ;;  %2200 = vmatpush3.msra.mxu0 %v1468_v53 }
 0x754   :  { %v1315_v60 = vmul.f32 %v2293_v58, %v2289_v48  ;;  %2209 = vmatprep.subr.mxu0 %v2401_v16 }
 0x756   :  { %2197 = vmatmul.mubr.msk.f32.vlgmr.msra.gmra.mrb[18].mxu1 %vm321_vm2, %v1315_v60 }
 0x757   :  { %2205 = vmatpush3.xpose.msk.msra.mxu1 %vm321_vm2, %v1555_v55  ;;  %2206 = vmatprep.mubr.msk.f32.mxu1 %vm2402_vm1, %v2401_v16 }
 0x758   :  { %2214 = vmatprep.subr.mxu1 %v2401_v16 }
 0x75a   :  { %2207 = vmatmul.mubr.msk.f32.vlgmr.msra.gmra.mrb[20].mxu1 %vm321_vm2, %v1553_v61 }
 0x75b   :  { %2216 = vmatprep.mubr.msk.f32.mxu1 %vm2402_vm1, %v2401_v16 }
 0x825   :  { %v1388_v62 = vpop.f32.mrb[10].mxu0 }
 0x826   :  { %v2193_v63 = vpop.f32.mrb[11].mxu0  ;;  %2201 = vmatprep.mubr.msk.f32.mxu0 %vm321_vm2, %v1388_v62 }
 0x829   :  { %v1464_v0 = vpop.f32.mrb[18].mxu1 }
 0x82a   :  { %v2198_v1 = vpop.f32.mrb[19].mxu1  ;;  %2202 = vmatmul.mubr.msk.f32.vlgmr.msra.gmra.mrb[8].mxu0 %vm321_vm2, %v1464_v0 }
 0x82b   :  { %2210 = vmatpush3.xpose.msk.msra.mxu0 %vm321_vm2, %v1633_v59  ;;  %2211 = vmatprep.mubr.msk.f32.mxu0 %vm2402_vm1, %v2401_v16 }
 0x82c   :  { %2219 = vmatprep.subr.mxu0 %v2401_v16 }
 0x82d   :  { %v1626_v3 = vpop.f32.mrb[20].mxu1 }
 0x82e   :  { %v2208_v4 = vpop.f32.mrb[21].mxu1  ;;  %2212 = vmatmul.mubr.msk.f32.vlgmr.msra.gmra.mrb[12].mxu0 %vm321_vm2, %v1631_v2  ;;  %v1708_v5 = vsel %vm321_vm2, %v1626_v3, -inf }
 0x82f   :  { %1709 = vmax.xlane.f32.xlu0 %v1708_v5  ;;  %2221 = vmatprep.mubr.msk.f32.mxu0 %vm2402_vm1, %v2401_v16 }
 0x8bc   :  { %v1710_v6 = vpop.xlane.xlu0 %1709 }
 0x8bd   :  { %v1714_v7 = vsub.f32 %v1626_v3, %v1710_v6 }
 0x8bf   :  { %v1716_v8 = vmul.f32 1.442695, %v1714_v7 }
 0x8c1   :  { %2294 = vpow2.f32 %v1716_v8 }
 0x8cb   :  { %v2295_v9 = vpop.eup %2294 }
 0x8cc   :  { %v1720_v10 = vsel %vm321_vm2, %v2295_v9, 0.0 }
 0x8cd   :  { %1721 = vadd.xlane.f32.xlu0 %v1720_v10 }
 0x901   :  { %v1704_v11 = vpop.f32.mrb[12].mxu0 }
 0x902   :  { %v2213_v12 = vpop.f32.mrb[13].mxu0  ;;  %v1711_v13 = vsel %vm321_vm2, %v1704_v11, -inf }
 0x903   :  { %1712 = vmax.xlane.f32.xlu1 %v1711_v13 }
 0x914   :  { %1806 = vrot.lane.b32.xlu1 %v2526_v45, %s2405_s26 }
 0x95a   :  { %v1722_v24 = vpop.xlane.xlu0 %1721 }
 0x990   :  { %v1713_v14 = vpop.xlane.xlu1 %1712 }
 0x991   :  { %v1715_v15 = vsub.f32 %v1704_v11, %v1713_v14 }
 0x993   :  { %v1718_v21 = vmul.f32 1.442695, %v1715_v15 }
 0x994   :  { %v1807_v16 = vpop.permute.xlu1 %1806 }
 0x995   :  { %2296 = vpow2.f32 %v1718_v21  ;;  %2220 = vmatpush3.msra.mxu0 %v1807_v16 }
 0x996   :  { %2298 = vrcp.f32 %v1722_v24  ;;  %2224 = vmatprep.subr.mxu0 %v1882_v30 }
 0x99f   :  { %v2297_v22 = vpop.eup %2296 }
 0x9a0   :  { %v1723_v23 = vsel %vm321_vm2, %v2297_v22, 0.0  ;;  %v2299_v26 = vpop.eup %2298 }
 0x9a1   :  { %1724 = vadd.xlane.f32.xlu0 %v1723_v23  ;;  %v1727_v27 = vmul.f32 %v2299_v26, %v2295_v9 }
 0x9b7   :  { %1730 = vrot.lane.b32.xlu0 %v2528_v46, %s2405_s26 }
 0xa2e   :  { %v1725_v25 = vpop.xlane.xlu0 %1724 }
 0xa2f   :  { %2300 = vrcp.f32 %v1725_v25 }
 0xa32   :  { %v1731_v45 = vpop.permute.xlu0 %1730 }
 0xa33   :  { %2215 = vmatpush3.msra.mxu1 %v1731_v45 }
 0xa34   :  { %2217 = vmatmul.mubr.msk.f32.vlgmr.msra.gmra.mrb[22].mxu1 %vm321_vm2, %v1727_v27 }
 0xa39   :  { %v2301_v28 = vpop.eup %2300 }
 0xa3a   :  { %v1729_v29 = vmul.f32 %v2301_v28, %v2297_v22 }
 0xa3c   :  { %2222 = vmatmul.mubr.msk.f32.vlgmr.msra.gmra.mrb[14].mxu0 %vm321_vm2, %v1729_v29 }
 0xa3d   :  { %2225 = vmatpush3.msra.mxu0 %v1882_v30 }
 0xb07   :  { %v1802_v31 = vpop.f32.mrb[22].mxu1 }
 0xb08   :  { %v2218_v18 = vpop.f32.mrb[23].mxu1  ;;  %2226 = vmatprep.mubr.msk.f32.mxu0 %vm321_vm2, %v1802_v31 }
 0xb0f   :  { %v1878_v46 = vpop.f32.mrb[14].mxu0 }
 0xb10   :  { %v2223_v32 = vpop.f32.mrb[15].mxu0  ;;  %2227 = vmatmul.mubr.msk.f32.vlgmr.msra.gmra.mrb[8].mxu0 %vm321_vm2, %v1878_v46 }
 0xbe3   :  { %v2228_v17 = vpop.f32.mrb[8].mxu0 }
 0xbe4   :  { %v1974_v20 = vadd.f32 %v2228_v17, %v2033_v33  ;;  %v1955_v34 = vpop.f32.mrb[9].mxu0 }
 0xbe5   :  { %v1973_v35 = vadd.f32 %v2033_v33, %v1955_v34 }
 0xbe6   :  { %1976 = vst.msk [vmem:[#allocation8 + $0x8] sm:$0xff] %vm77_vm0, %v1974_v20 }
 0xbe7   :  { %1975 = vst.msk [vmem:[#allocation8] sm:$0xff] %vm77_vm0, %v1973_v35 }
 0xbe8   :  { %2379 = shalt.err (!%p2376_p0)
}
 0xbe9   :  { %s2380_s9 = scalar_lea.hbm %s2670_s4, 256 }
 0xbea   :  { %p2381_p1 = scmp.ne.s32.totalorder %s2670_s4, %s2380_s9  ;;  %p2384_p2 = scmp.lt.u32.totalorder %s2380_s9, %s2670_s4 }
 0xbec   :  { %p2386_p3 = pnand %p2384_p2, %p2381_p1 }
 0xbee   :  { %2389 = shalt.err (!%p2386_p3)
}
 0xbef   :  { %1988 = dma.vmem_to_hbm [thread:$0]  %s1983_s6, 256, %s2670_s4, [#allocation4], %s2398_s27, %s2398_s27, %s2399_s28  }
 0xbf0   :  { %2394 = dma.done.wait [#allocation4], 256  }
 0xbf1   :  { %2395 = vsyncadd [#allocation4], 4294967040 }
 0xbf2   :  { %1992 = vsyncpa [#allocation3], 1 }
 0xbf3   :  { %1993 = vsyncpa [#allocation6], 1 }
 0xbf4   :  { %1994 = vsyncpa [#allocation4], 1 }

</bundles_post_ra>
